<compile_context>
chip_gen: v7x
topology: tpu7x:2x2x1
jax: 0.10.0
libtpu: 0.0.40
codegen_flags: <defaults>
</compile_context>

<pallas_src>
import functools

import jax
import jax.numpy as jnp
from jax import lax
from jax.experimental import pallas as pl
from jax.experimental.pallas import tpu as pltpu


def _spatial_block_kernel(x_ref, wm_ref, bm_ref, w1_ref, w2_ref, o_ref, *, c, hw):
    # x_ref : (Bt, C*HW)  VMEM, lane-dense batch tile
    # wm_ref: (1, C)      SMEM, 1x1-conv weight (out_channels=1)
    # bm_ref: (1, 1)      SMEM, 1x1-conv bias
    # w1_ref: (R, HW)     VMEM, fc1 weight in PyTorch (out, in) layout
    # w2_ref: (HW, R)     VMEM, fc2 weight in PyTorch (out, in) layout
    x = x_ref[...]
    xf = x.astype(jnp.float32)  # keep elementwise math in f32 (v5e-safe)

    # 1x1 conv == per-pixel reduction over channels. C is tiny, so do it on
    # the VPU with lane-aligned static chunk slices instead of an M=1/K=C
    # matmul (which would waste the MXU and sit on the critical path).
    y = bm_ref[0, 0] + wm_ref[0, 0] * xf[:, 0:hw]
    for ch in range(1, c):
        y = y + wm_ref[0, ch] * xf[:, ch * hw:(ch + 1) * hw]          # (Bt, HW)

    # fc1 + ReLU: (Bt, HW) x (R, HW)^T -> (Bt, R); contract dim 1 of both so
    # no transposed weight copy is ever materialized.
    h = lax.dot_general(y, w1_ref[...],
                        dimension_numbers=(((1,), (1,)), ((), ())),
                        preferred_element_type=jnp.float32)
    h = jnp.maximum(h, 0.0)

    # fc2 + Sigmoid: (Bt, R) x (HW, R)^T -> (Bt, HW) spatial gate.
    g = lax.dot_general(h, w2_ref[...],
                        dimension_numbers=(((1,), (1,)), ((), ())),
                        preferred_element_type=jnp.float32)
    g = jax.nn.sigmoid(g)

    # Broadcast the gate over channels and scale the input; full-lane stores.
    for ch in range(c):
        o_ref[:, ch * hw:(ch + 1) * hw] = (
            xf[:, ch * hw:(ch + 1) * hw] * g).astype(o_ref.dtype)


def spatial_block(x, w_mean, b_mean, w1, w2, *, batch_tile=None):
    """x: (B, C, H, W); w_mean: (1, C); b_mean: (1, 1);
       w1: (R, HW); w2: (HW, R)  [PyTorch Linear / Conv2d weight conventions]."""
    b, c, h, w = x.shape
    hw = h * w
    r = w1.shape[0]
    assert w_mean.shape == (1, c)
    assert b_mean.shape == (1, 1)
    assert w1.shape == (r, hw) and w2.shape == (hw, r)

    # Lane-dense 2-D view; the reshapes are metadata-only bitcasts.
    x2 = x.reshape(b, c * hw)

    # Pick a batch tile: whole batch if small, otherwise a multiple of 8 rows
    # sized for ~4 MiB input tiles (amortizes per-step overhead, feeds MXU
    # with M >> 1) and capped at 128.
    if batch_tile is not None:
        bt = batch_tile
    elif b <= 8:
        bt = b
    else:
        row_bytes = c * hw * jnp.dtype(x.dtype).itemsize
        bt = max(8, min(128, (4 << 20) // max(row_bytes, 1)))
        bt = max(8, (bt // 8) * 8)
        bt = min(bt, (b // 8) * 8)
    grid = (pl.cdiv(b, bt),)

    itemsize = jnp.dtype(x.dtype).itemsize
    blk_bytes = bt * c * hw * itemsize                  # one (Bt, C*HW) block
    w_bytes = 2 * r * hw * jnp.dtype(w1.dtype).itemsize # fc1 + fc2 weights
    # in + out, double-buffered, plus resident weights and slack; cap so the
    # request stays inside v7x's 64 MiB physical VMEM.
    vmem_limit = int(min(max(4 * blk_bytes + 2 * w_bytes + (2 << 20), 16 << 20),
                         48 << 20))

    out2 = pl.pallas_call(
        functools.partial(_spatial_block_kernel, c=c, hw=hw),
        out_shape=jax.ShapeDtypeStruct((b, c * hw), x.dtype),
        grid=grid,
        in_specs=[
            pl.BlockSpec((bt, c * hw), lambda i: (i, 0)),
            pl.BlockSpec(memory_space=pltpu.MemorySpace.SMEM),   # conv weight
            pl.BlockSpec(memory_space=pltpu.MemorySpace.SMEM),   # conv bias
            pl.BlockSpec((r, hw), lambda i: (0, 0)),             # fc1 weight
            pl.BlockSpec((hw, r), lambda i: (0, 0)),             # fc2 weight
        ],
        out_specs=pl.BlockSpec((bt, c * hw), lambda i: (i, 0)),
        compiler_params=pltpu.CompilerParams(
            dimension_semantics=("parallel",),
            vmem_limit_bytes=vmem_limit,
        ),
    )(x2, w_mean, b_mean, w1, w2)
    return out2.reshape(b, c, h, w)


def spatial_block_ref(x, w_mean, b_mean, w1, w2):
    b, c, h, w = x.shape
    hw = h * w
    x3 = x.reshape(b, c, hw).astype(jnp.float32)
    y = jnp.einsum("oc,bcp->bp", w_mean, x3) + b_mean[0, 0]   # (B, HW)
    y = jnp.maximum(y @ w1.T, 0.0)                            # (B, R)
    y = jax.nn.sigmoid(y @ w2.T)                              # (B, HW)
    return (x3 * y[:, None, :]).reshape(b, c, h, w).astype(x.dtype)


if __name__ == "__main__":
    # Small shapes consistent with the module: input_dim = H*W
    B, C, H, W = 2, 4, 16, 16
    HW = H * W
    R = 64  # "reduction"

    key = jax.random.PRNGKey(0)
    kx, kwm, kbm, kw1, kw2 = jax.random.split(key, 5)

    x = jax.random.normal(kx, (B, C, H, W), dtype=jnp.float32)
    # Conv2d(C, 1, kernel_size=1): weight (1, C, 1, 1) -> (1, C), bias (1,) -> (1, 1)
    w_mean = jax.random.normal(kwm, (1, C), dtype=jnp.float32) * 0.5
    b_mean = jax.random.normal(kbm, (1, 1), dtype=jnp.float32) * 0.1
    # Linear(HW, R, bias=False): weight (R, HW); Linear(R, HW, bias=False): (HW, R)
    w1 = jax.random.normal(kw1, (R, HW), dtype=jnp.float32) * 0.05
    w2 = jax.random.normal(kw2, (HW, R), dtype=jnp.float32) * 0.05

    out = spatial_block(x, w_mean, b_mean, w1, w2)
    out = jax.block_until_ready(out)

    ref = spatial_block_ref(x, w_mean, b_mean, w1, w2)
    assert out.shape == (B, C, H, W)
    assert jnp.allclose(out, ref, atol=1e-5, rtol=1e-5), "mismatch vs JAX reference"

    print("KERNEL_OK")
</pallas_src>

<mosaic_0001>
module attributes {stable_mosaic.version = 11 : i64} {
  func.func @_spatial_block_kernel(%arg0: i32, %arg1: memref<2x1024xf32, #tpu.memory_space<vmem>>, %arg2: memref<1x4xf32, #tpu.memory_space<smem>>, %arg3: memref<1x1xf32, #tpu.memory_space<smem>>, %arg4: memref<64x256xf32, #tpu.memory_space<vmem>>, %arg5: memref<256x64xf32, #tpu.memory_space<vmem>>, %arg6: memref<2x1024xf32, #tpu.memory_space<vmem>>) attributes {dimension_semantics = [#tpu.dimension_semantics<parallel>], iteration_bounds = array<i64: 1>, scalar_prefetch = 0 : i64, scratch_operands = 0 : i64, tpu.core_type = #tpu.core_type<tc>, window_params = [{transform_indices = @transform_0, window_bounds = array<i64: 2, 1024>}, {transform_indices = @transform_1, window_bounds = array<i64: 1, 4>}, {transform_indices = @transform_2, window_bounds = array<i64: 1, 1>}, {pipeline_mode = #tpu.pipeline_mode<synchronous>, transform_indices = @transform_3, window_bounds = array<i64: 64, 256>}, {pipeline_mode = #tpu.pipeline_mode<synchronous>, transform_indices = @transform_4, window_bounds = array<i64: 256, 64>}, {transform_indices = @transform_5, window_bounds = array<i64: 2, 1024>}]} {
    %c0 = arith.constant 0 : index
    %c0_0 = arith.constant 0 : index
    %0 = vector.load %arg1[%c0, %c0_0] : memref<2x1024xf32, #tpu.memory_space<vmem>>, vector<2x1024xf32>
    %c0_1 = arith.constant 0 : index
    %c0_2 = arith.constant 0 : index
    %1 = memref.load %arg3[%c0_1, %c0_2] : memref<1x1xf32, #tpu.memory_space<smem>>
    %c0_3 = arith.constant 0 : index
    %c0_4 = arith.constant 0 : index
    %2 = memref.load %arg2[%c0_3, %c0_4] : memref<1x4xf32, #tpu.memory_space<smem>>
    %3 = vector.extract_strided_slice %0 {offsets = [0, 0], sizes = [2, 256], strides = [1, 1]} : vector<2x1024xf32> to vector<2x256xf32>
    %4 = vector.broadcast %2 : f32 to vector<2x256xf32>
    %5 = arith.mulf %4, %3 : vector<2x256xf32>
    %6 = vector.broadcast %1 : f32 to vector<2x256xf32>
    %7 = arith.addf %6, %5 : vector<2x256xf32>
    %c0_5 = arith.constant 0 : index
    %c1 = arith.constant 1 : index
    %8 = memref.load %arg2[%c0_5, %c1] : memref<1x4xf32, #tpu.memory_space<smem>>
    %9 = vector.extract_strided_slice %0 {offsets = [0, 256], sizes = [2, 256], strides = [1, 1]} : vector<2x1024xf32> to vector<2x256xf32>
    %10 = vector.broadcast %8 : f32 to vector<2x256xf32>
    %11 = arith.mulf %10, %9 : vector<2x256xf32>
    %12 = arith.addf %7, %11 : vector<2x256xf32>
    %c0_6 = arith.constant 0 : index
    %c2 = arith.constant 2 : index
    %13 = memref.load %arg2[%c0_6, %c2] : memref<1x4xf32, #tpu.memory_space<smem>>
    %14 = vector.extract_strided_slice %0 {offsets = [0, 512], sizes = [2, 256], strides = [1, 1]} : vector<2x1024xf32> to vector<2x256xf32>
    %15 = vector.broadcast %13 : f32 to vector<2x256xf32>
    %16 = arith.mulf %15, %14 : vector<2x256xf32>
    %17 = arith.addf %12, %16 : vector<2x256xf32>
    %c0_7 = arith.constant 0 : index
    %c3 = arith.constant 3 : index
    %18 = memref.load %arg2[%c0_7, %c3] : memref<1x4xf32, #tpu.memory_space<smem>>
    %19 = vector.extract_strided_slice %0 {offsets = [0, 768], sizes = [2, 256], strides = [1, 1]} : vector<2x1024xf32> to vector<2x256xf32>
    %20 = vector.broadcast %18 : f32 to vector<2x256xf32>
    %21 = arith.mulf %20, %19 : vector<2x256xf32>
    %22 = arith.addf %17, %21 : vector<2x256xf32>
    %c0_8 = arith.constant 0 : index
    %c0_9 = arith.constant 0 : index
    %23 = vector.load %arg4[%c0_8, %c0_9] : memref<64x256xf32, #tpu.memory_space<vmem>>, vector<64x256xf32>
    %cst = arith.constant dense<0.000000e+00> : vector<2x64xf32>
    %24 = tpu.matmul %22, %23, %cst {dimension_numbers = #tpu.dot_dimension_numbers<[1], [1], [0], [0], [0, 0, 1, 0], [], []>} : vector<2x256xf32>, vector<64x256xf32>, vector<2x64xf32> -> vector<2x64xf32>
    %cst_10 = arith.constant 0.000000e+00 : f32
    %25 = vector.broadcast %cst_10 : f32 to vector<2x64xf32>
    %26 = arith.maximumf %24, %25 : vector<2x64xf32>
    %c0_11 = arith.constant 0 : index
    %c0_12 = arith.constant 0 : index
    %27 = vector.load %arg5[%c0_11, %c0_12] : memref<256x64xf32, #tpu.memory_space<vmem>>, vector<256x64xf32>
    %cst_13 = arith.constant dense<0.000000e+00> : vector<2x256xf32>
    %28 = tpu.matmul %26, %27, %cst_13 {dimension_numbers = #tpu.dot_dimension_numbers<[1], [1], [0], [0], [0, 0, 1, 0], [], []>} : vector<2x64xf32>, vector<256x64xf32>, vector<2x256xf32> -> vector<2x256xf32>
    %29 = arith.negf %28 : vector<2x256xf32>
    %30 = math.exp %29 : vector<2x256xf32>
    %cst_14 = arith.constant 1.000000e+00 : f32
    %31 = vector.broadcast %cst_14 : f32 to vector<2x256xf32>
    %32 = arith.addf %31, %30 : vector<2x256xf32>
    %33 = arith.divf %31, %32 : vector<2x256xf32>
    %34 = vector.extract_strided_slice %0 {offsets = [0, 0], sizes = [2, 256], strides = [1, 1]} : vector<2x1024xf32> to vector<2x256xf32>
    %35 = arith.mulf %34, %33 : vector<2x256xf32>
    %c0_15 = arith.constant 0 : index
    %c0_16 = arith.constant 0 : index
    %36 = vector.load %arg6[%c0_15, %c0_16] : memref<2x1024xf32, #tpu.memory_space<vmem>>, vector<2x256xf32>
    tpu.vector_store %arg6[%c0_15, %c0_16], %35 {strides = array<i32>} : memref<2x1024xf32, #tpu.memory_space<vmem>>, vector<2x256xf32>,
    %37 = vector.extract_strided_slice %0 {offsets = [0, 256], sizes = [2, 256], strides = [1, 1]} : vector<2x1024xf32> to vector<2x256xf32>
    %38 = arith.mulf %37, %33 : vector<2x256xf32>
    %c0_17 = arith.constant 0 : index
    %c256 = arith.constant 256 : index
    %39 = vector.load %arg6[%c0_17, %c256] : memref<2x1024xf32, #tpu.memory_space<vmem>>, vector<2x256xf32>
    tpu.vector_store %arg6[%c0_17, %c256], %38 {strides = array<i32>} : memref<2x1024xf32, #tpu.memory_space<vmem>>, vector<2x256xf32>,
    %40 = vector.extract_strided_slice %0 {offsets = [0, 512], sizes = [2, 256], strides = [1, 1]} : vector<2x1024xf32> to vector<2x256xf32>
    %41 = arith.mulf %40, %33 : vector<2x256xf32>
    %c0_18 = arith.constant 0 : index
    %c512 = arith.constant 512 : index
    %42 = vector.load %arg6[%c0_18, %c512] : memref<2x1024xf32, #tpu.memory_space<vmem>>, vector<2x256xf32>
    tpu.vector_store %arg6[%c0_18, %c512], %41 {strides = array<i32>} : memref<2x1024xf32, #tpu.memory_space<vmem>>, vector<2x256xf32>,
    %43 = vector.extract_strided_slice %0 {offsets = [0, 768], sizes = [2, 256], strides = [1, 1]} : vector<2x1024xf32> to vector<2x256xf32>
    %44 = arith.mulf %43, %33 : vector<2x256xf32>
    %c0_19 = arith.constant 0 : index
    %c768 = arith.constant 768 : index
    %45 = vector.load %arg6[%c0_19, %c768] : memref<2x1024xf32, #tpu.memory_space<vmem>>, vector<2x256xf32>
    tpu.vector_store %arg6[%c0_19, %c768], %44 {strides = array<i32>} : memref<2x1024xf32, #tpu.memory_space<vmem>>, vector<2x256xf32>,
    return
  }
  func.func @transform_0(%arg0: i32) -> (i32, i32) {
    %c0_i32 = arith.constant 0 : i32
    %c0_i32_0 = arith.constant 0 : i32
    return %arg0, %c0_i32 : i32, i32
  }
  func.func @transform_1(%arg0: i32) -> (i32, i32) {
    %c0_i32 = arith.constant 0 : i32
    %c0_i32_0 = arith.constant 0 : i32
    %c0_i32_1 = arith.constant 0 : i32
    return %c0_i32, %c0_i32_0 : i32, i32
  }
  func.func @transform_2(%arg0: i32) -> (i32, i32) {
    %c0_i32 = arith.constant 0 : i32
    %c0_i32_0 = arith.constant 0 : i32
    %c0_i32_1 = arith.constant 0 : i32
    return %c0_i32, %c0_i32_0 : i32, i32
  }
  func.func @transform_3(%arg0: i32) -> (i32, i32) {
    %c0_i32 = arith.constant 0 : i32
    %c0_i32_0 = arith.constant 0 : i32
    %c0_i32_1 = arith.constant 0 : i32
    return %c0_i32, %c0_i32_0 : i32, i32
  }
  func.func @transform_4(%arg0: i32) -> (i32, i32) {
    %c0_i32 = arith.constant 0 : i32
    %c0_i32_0 = arith.constant 0 : i32
    %c0_i32_1 = arith.constant 0 : i32
    return %c0_i32, %c0_i32_0 : i32, i32
  }
  func.func @transform_5(%arg0: i32) -> (i32, i32) {
    %c0_i32 = arith.constant 0 : i32
    %c0_i32_0 = arith.constant 0 : i32
    return %arg0, %c0_i32 : i32, i32
  }
}

</mosaic_0001>

<bundles_post_ra>
// kernel: tpu_custom_call.1
= control target key start
LH: loop header
LB: loop body
LE: loop exit
PB: predicated region body
PF: predicated region fallthrough
CT: control target
= control target key end

     0   :  { %11 = vsyncpa [#allocation5], 0  ;;  %s868_s0 = inlined_call_operand.vmem [shape: f32[2,1024], index: 0, kind: input, shape index: {}]   ;;  %s869_s1 = inlined_call_operand.vmem [shape: f32[1,4], index: 1, kind: input, shape index: {}]   ;;  %s870_s2 = inlined_call_operand.<no memory space> [shape: f32[1,1], index: 2, kind: input, shape index: {}]   ;;  %s871_s3 = inlined_call_operand.vmem [shape: f32[64,256], index: 3, kind: input, shape index: {}]   ;;  %s872_s4 = inlined_call_operand.vmem [shape: f32[256,64], index: 4, kind: input, shape index: {}]   ;;  %s873_s5 = inlined_call_operand.hbm [shape: f32[2,1024], index: 5, kind: output, shape index: {}]  }
   0x1   :  { %12 = vsyncpa [#allocation4], 0  ;;  %s21_s20 = sshll.u32 %s869_s1, 4  ;;  %s22_s20 = int_to_ptr.vmem [resolvable:$true] %s21_s20 }
   0x2   :  { %s555_s21 = scalar_lea.vmem %s22_s20, 16  ;;  %p560_p1 = scmp.lt.s32.totalorder %s22_s20, %s22_s20 }
   0x3   :  { %p556_p0 = scmp.ne.s32.totalorder %s22_s20, %s555_s21  ;;  %p561_p2 = scmp.lt.s32.totalorder %s555_s21, %s555_s21 }
   0x5   :  { %p562_p3 = por %p561_p2, %p560_p1 }
   0x7   :  { %p563_p4 = pnand %p562_p3, %p556_p0 }
   0x9   :  { %566 = shalt.err (!%p563_p4)
}
   0xa   :  { %s593_s22 = smov [#allocation3]  }
   0xb   :  { %24 = dma.vmem_to_smem %s22_s20, 16, %s593_s22, [#allocation5]  }
   0xc   :  { %589 = dma.done.wait [#allocation5], 16  }
   0xd   :  { %590 = vsyncadd [#allocation5], 4294967280 }
   0xe   :  { %34 = sfence }
   0xf   :  { %v62_v0 = vld [vmem:[%s871_s3 + $0x8] sm:$0xff]  ;;  %v64_v1 = vld [vmem:[%s871_s3 + $0x18] sm:$0xff]  ;;  %v61_v2 = vld [vmem:[%s871_s3] sm:$0xff]  ;;  %s638_s28 = sld [smem:[#allocation3]]  ;;  %s649_s10 = sld [smem:[#allocation3 + $0x1]]  ;;  %v81_v9 = vlaneseq  ;;  %vm191_vm0 = vcmask 523264   ;;  %v41_v16 = vstv %s870_s2 }
  0x10   :  { %v480_v3 = vpack.c.bf16 %v64_v1, %v62_v0  ;;  %v63_v4 = vld [vmem:[%s871_s3 + $0x10] sm:$0xff]  ;;  %v66_v5 = vld [vmem:[%s871_s3 + $0x28] sm:$0xff]  ;;  %v68_v6 = vld [vmem:[%s871_s3 + $0x38] sm:$0xff]  ;;  %s651_s11 = sld [smem:[#allocation3 + $0x2]]  ;;  %s659_s16 = sld [smem:[#allocation3 + $0x3]] }
  0x11   :  { %v482_v7 = vpack.c.bf16 %v63_v4, %v61_v2  ;;  %v484_v8 = vpack.c.bf16 %v68_v6, %v66_v5  ;;  %v65_v10 = vld [vmem:[%s871_s3 + $0x20] sm:$0xff]  ;;  %v67_v11 = vld [vmem:[%s871_s3 + $0x30] sm:$0xff]  ;;  %v70_v12 = vld [vmem:[%s871_s3 + $0x48] sm:$0xff]  ;;  %v594_v17 = vmov 1983009808   ;;  %v82_v22 = vshrl.u32 %v81_v9, 7 }
  0x12   :  { %481 = vmatprep.subr.bf16.mxu0 %v480_v3  ;;  %v72_v13 = vld [vmem:[%s871_s3 + $0x58] sm:$0xff]  ;;  %v670_v14 = vld [vmem:[%s868_s0] sm:$0xff]  ;;  %v675_v15 = vld [vmem:[%s868_s0 + $0x8] sm:$0xff]  ;;  %v79_v18 = vunpack.c.l.s4 %v594_v17  ;;  %v486_v19 = vpack.c.bf16 %v67_v11, %v65_v10 }
  0x13   :  { %483 = vmatpush1.bf16.xpose.msra.mxu0 %v482_v7  ;;  %v46_v21 = vrot.slane %v670_v14, 4  ;;  %v175_v23 = vld [vmem:[%s872_s4 + $0x80] sm:$0xff]  ;;  %v176_v24 = vld [vmem:[%s872_s4 + $0x88] sm:$0xff]  ;;  %vm690_vm1 = vmpackc.low %vm191_vm0, %vm191_vm0  ;;  %v57_v28 = vrot.slane %v675_v15, 4  ;;  %v488_v33 = vpack.c.bf16 %v72_v13, %v70_v12 }
  0x14   :  { %485 = vmatprep.subr.bf16.mxu0 %v484_v8  ;;  %v496_v29 = vpack.c.bf16 %v176_v24, %v175_v23  ;;  %v159_v30 = vld [vmem:[%s872_s4] sm:$0xff]  ;;  %v160_v31 = vld [vmem:[%s872_s4 + $0x8] sm:$0xff]  ;;  %v177_v32 = vld [vmem:[%s872_s4 + $0x90] sm:$0xff]  ;;  %v80_v41 = vunpack.c.0.s8 %v79_v18 }
  0x15   :  { %v39_v20 = vstv %s638_s28  ;;  %v44_v27 = vstv %s649_s10  ;;  %v499_v36 = vpack.c.bf16 %v160_v31, %v159_v30  ;;  %v178_v37 = vld [vmem:[%s872_s4 + $0x98] sm:$0xff]  ;;  %v161_v45 = vld [vmem:[%s872_s4 + $0x10] sm:$0xff] }
  0x16   :  { %v40_v26 = vmul.f32 %v39_v20, %v670_v14  ;;  %v48_v34 = vmul.f32 %v46_v21, %v44_v27  ;;  %v51_v35 = vstv %s651_s11  ;;  %v55_v40 = vstv %s659_s16  ;;  %498 = vmatprep.subr.msk.bf16.mxu1 %vm690_vm1, %v496_v29  ;;  %v162_v46 = vld [vmem:[%s872_s4 + $0x18] sm:$0xff]  ;;  %v179_v47 = vld [vmem:[%s872_s4 + $0xa0] sm:$0xff] }
  0x17   :  { %v52_v39 = vmul.f32 %v51_v35, %v675_v15  ;;  %501 = vmatpush3.bf16.xpose.msk.msra.mxu1 %vm690_vm1, %v499_v36  ;;  %v502_v42 = vpack.c.bf16 %v178_v37, %v177_v32  ;;  %v59_v44 = vmul.f32 %v57_v28, %v55_v40  ;;  %v180_v48 = vld [vmem:[%s872_s4 + $0xa8] sm:$0xff]  ;;  %v69_v49 = vld [vmem:[%s871_s3 + $0x40] sm:$0xff]  ;;  %v71_v50 = vld [vmem:[%s871_s3 + $0x50] sm:$0xff]  ;;  %v740_v52 = vsub.s32 %v80_v41, %v82_v22 }
  0x18   :  { %v42_v38 = vadd.f32 %v41_v16, %v40_v26  ;;  %v74_v53 = vld [vmem:[%s871_s3 + $0x68] sm:$0xff]  ;;  %v76_v54 = vld [vmem:[%s871_s3 + $0x78] sm:$0xff]  ;;  %v505_v55 = vpack.c.bf16 %v162_v46, %v161_v45  ;;  %v508_v57 = vpack.c.bf16 %v180_v48, %v179_v47  ;;  %v490_v58 = vpack.c.bf16 %v71_v50, %v69_v49  ;;  %v163_v62 = vld [vmem:[%s872_s4 + $0x20] sm:$0xff] }
  0x19   :  { %504 = vmatprep.subr.msk.bf16.mxu1 %vm690_vm1, %v502_v42  ;;  %v492_v59 = vpack.c.bf16 %v76_v54, %v74_v53  ;;  %v164_v63 = vld [vmem:[%s872_s4 + $0x28] sm:$0xff]  ;;  %v181_v0 = vld [vmem:[%s872_s4 + $0xb0] sm:$0xff]  ;;  %v182_v1 = vld [vmem:[%s872_s4 + $0xb8] sm:$0xff] }
  0x1a   :  { %v49_v43 = vadd.f32 %v48_v34, %v42_v38  ;;  %v73_v2 = vld [vmem:[%s871_s3 + $0x60] sm:$0xff]  ;;  %v75_v3 = vld [vmem:[%s871_s3 + $0x70] sm:$0xff]  ;;  %v511_v4 = vpack.c.bf16 %v164_v63, %v163_v62  ;;  %v514_v5 = vpack.c.bf16 %v182_v1, %v181_v0  ;;  %v166_v8 = vld [vmem:[%s872_s4 + $0x38] sm:$0xff] }
  0x1b   :  { %487 = vmatpush1.bf16.xpose.msra.mxu0 %v486_v19  ;;  %v494_v6 = vpack.c.bf16 %v75_v3, %v73_v2  ;;  %v165_v7 = vld [vmem:[%s872_s4 + $0x30] sm:$0xff]  ;;  %v183_v9 = vld [vmem:[%s872_s4 + $0xc0] sm:$0xff]  ;;  %v184_v10 = vld [vmem:[%s872_s4 + $0xc8] sm:$0xff] }
  0x1c   :  { %489 = vmatprep.subr.bf16.mxu0 %v488_v33  ;;  %v53_v51 = vadd.f32 %v52_v39, %v49_v43  ;;  %v517_v11 = vpack.c.bf16 %v166_v8, %v165_v7  ;;  %v520_v12 = vpack.c.bf16 %v184_v10, %v183_v9  ;;  %v167_v13 = vld [vmem:[%s872_s4 + $0x40] sm:$0xff]  ;;  %v168_v16 = vld [vmem:[%s872_s4 + $0x48] sm:$0xff]  ;;  %v185_v17 = vld [vmem:[%s872_s4 + $0xd0] sm:$0xff] }
  0x1d   :  { %v186_v18 = vld [vmem:[%s872_s4 + $0xd8] sm:$0xff]  ;;  %v523_v19 = vpack.c.bf16 %v168_v16, %v167_v13  ;;  %v169_v22 = vld [vmem:[%s872_s4 + $0x50] sm:$0xff]  ;;  %v187_v24 = vld [vmem:[%s872_s4 + $0xe0] sm:$0xff] }
  0x1e   :  { %v60_v56 = vadd.f32 %v59_v44, %v53_v51  ;;  %v526_v20 = vpack.c.bf16 %v186_v18, %v185_v17  ;;  %v170_v23 = vld [vmem:[%s872_s4 + $0x58] sm:$0xff]  ;;  %v188_v26 = vld [vmem:[%s872_s4 + $0xe8] sm:$0xff]  ;;  %v171_v30 = vld [vmem:[%s872_s4 + $0x60] sm:$0xff] }
  0x1f   :  { %507 = vmatpush3.bf16.xpose.msk.msra.mxu1 %vm690_vm1, %v505_v55  ;;  %v529_v27 = vpack.c.bf16 %v170_v23, %v169_v22  ;;  %v532_v29 = vpack.c.bf16 %v188_v26, %v187_v24  ;;  %v172_v31 = vld [vmem:[%s872_s4 + $0x68] sm:$0xff]  ;;  %v189_v32 = vld [vmem:[%s872_s4 + $0xf0] sm:$0xff]  ;;  %v190_v33 = vld [vmem:[%s872_s4 + $0xf8] sm:$0xff] }
  0x20   :  { %v84_v60 = vrot.slane %v60_v56, %v740_v52  ;;  %510 = vmatprep.subr.msk.bf16.mxu1 %vm690_vm1, %v508_v57  ;;  %v535_v34 = vpack.c.bf16 %v172_v31, %v171_v30  ;;  %v538_v35 = vpack.c.bf16 %v190_v33, %v189_v32  ;;  %v173_v36 = vld [vmem:[%s872_s4 + $0x70] sm:$0xff]  ;;  %v174_v37 = vld [vmem:[%s872_s4 + $0x78] sm:$0xff]  ;;  %s595_s4 = smov [#allocation6]  }
  0x21   :  { %v541_v38 = vpack.c.bf16 %v174_v37, %v173_v36  ;;  %s399_s17 = sshll.u32 %s595_s4, 4  ;;  %s400_s17 = int_to_ptr.vmem [resolvable:$true] %s399_s17 }
  0x22   :  { %v85_v61 = vcombine.high %v84_v60, %v84_v60  ;;  %s567_s18 = scalar_lea.vmem %s400_s17, 256  ;;  %p572_p6 = scmp.lt.s32.totalorder %s400_s17, %s400_s17 }
  0x23   :  { %491 = vmatpush1.bf16.xpose.msra.mxu0 %v490_v58  ;;  %p568_p5 = scmp.ne.s32.totalorder %s400_s17, %s567_s18  ;;  %p573_p7 = scmp.lt.s32.totalorder %s567_s18, %s567_s18 }
  0x24   :  { %493 = vmatprep.subr.bf16.mxu0 %v492_v59  ;;  %152 = vmatprep.mubr.f32.mxu0 %v85_v61 }
  0x25   :  { %p574_p8 = por %p573_p7, %p572_p6 }
  0x27   :  { %513 = vmatpush3.bf16.xpose.msk.msra.mxu1 %vm690_vm1, %v511_v4  ;;  %p575_p9 = pnand %p574_p8, %p568_p5 }
  0x28   :  { %516 = vmatprep.subr.msk.bf16.mxu1 %vm690_vm1, %v514_v5 }
  0x2b   :  { %495 = vmatpush1.bf16.xpose.msra.mxu0 %v494_v6 }
  0x2f   :  { %519 = vmatpush3.bf16.xpose.msk.msra.mxu1 %vm690_vm1, %v517_v11 }
  0x30   :  { %522 = vmatprep.subr.msk.bf16.mxu1 %vm690_vm1, %v520_v12 }
  0x32   :  { %153 = vmatmul.mubr.f32.vlgmr.msra.gmra.mrb[0].mxu0 %v84_v60 }
  0x37   :  { %525 = vmatpush3.bf16.xpose.msk.msra.mxu1 %vm690_vm1, %v523_v19 }
  0x38   :  { %528 = vmatprep.subr.msk.bf16.mxu1 %vm690_vm1, %v526_v20 }
  0x3f   :  { %531 = vmatpush3.bf16.xpose.msk.msra.mxu1 %vm690_vm1, %v529_v27 }
  0x40   :  { %534 = vmatprep.subr.msk.bf16.mxu1 %vm690_vm1, %v532_v29 }
  0x47   :  { %537 = vmatpush3.bf16.xpose.msk.msra.mxu1 %vm690_vm1, %v535_v34 }
  0x48   :  { %540 = vmatprep.subr.msk.bf16.mxu1 %vm690_vm1, %v538_v35 }
  0x4f   :  { %543 = vmatpush3.bf16.xpose.msk.msra.mxu1 %vm690_vm1, %v541_v38 }
 0x105   :  { %v154_v39 = vpop.f32.mrb[0].mxu0 }
 0x106   :  { %v158_v40 = vmax.f32 %v154_v39, 0.0  ;;  %v156_v41 = vpop.f32.mrb[1].mxu0 }
 0x108   :  { %478 = vmatprep.mubr.msk.f32.mxu1 %vm191_vm0, %v158_v40 }
 0x109   :  { %479 = vmatmul.mubr.msk.f32.vlgmr.msra.gmra.mrb[0].mxu1 %vm191_vm0, %v158_v40 }
 0x1dc   :  { %v357_v42 = vpop.f32.mrb[0].mxu1 }
 0x1dd   :  { %v444_v43 = vmul.f32 -1.442695, %v357_v42  ;;  %v359_v44 = vpop.f32.mrb[1].mxu1 }
 0x1de   :  { %v445_v45 = vmul.f32 -1.442695, %v359_v44 }
 0x1df   :  { %547 = vpow2.f32 %v444_v43 }
 0x1e0   :  { %549 = vpow2.f32 %v445_v45 }
 0x1e9   :  { %v548_v46 = vpop.eup %547 }
 0x1ea   :  { %v550_v47 = vpop.eup %549  ;;  %v368_v48 = vadd.f32 1.0, %v548_v46 }
 0x1eb   :  { %v369_v49 = vadd.f32 1.0, %v550_v47 }
 0x1ec   :  { %551 = vrcp.f32 %v368_v48 }
 0x1ed   :  { %553 = vrcp.f32 %v369_v49 }
 0x1f6   :  { %v552_v25 = vpop.eup %551 }
 0x1f7   :  { %v554_v50 = vpop.eup %553 }
 0x1f8   :  { %v376_v51 = vcombine.low %v552_v25, %v554_v50 }
 0x1fa   :  { %v383_v53 = vrot.slane %v376_v51, %v740_v52 }
 0x1fc   :  { %v385_v54 = vmul.f32 %v383_v53, %v670_v14  ;;  %v387_v55 = vmul.f32 %v383_v53, %v46_v21  ;;  %v389_v56 = vmul.f32 %v383_v53, %v675_v15  ;;  %v391_v57 = vmul.f32 %v383_v53, %v57_v28 }
 0x1fe   :  { %386 = vst [vmem:[#allocation6] sm:$0xf] %v385_v54  ;;  %388 = vst [vmem:[#allocation6 + $0x4] sm:$0xf] %v387_v55 }
 0x1ff   :  { %390 = vst [vmem:[#allocation6 + $0x8] sm:$0xf] %v389_v56  ;;  %392 = vst [vmem:[#allocation6 + $0xc] sm:$0xf] %v391_v57 }
 0x200   :  { %578 = shalt.err (!%p575_p9)
}
 0x201   :  { %s579_s21 = scalar_lea.hbm %s873_s5, 256 }
 0x202   :  { %p580_p10 = scmp.ne.s32.totalorder %s873_s5, %s579_s21  ;;  %p583_p11 = scmp.lt.u32.totalorder %s579_s21, %s873_s5 }
 0x204   :  { %p585_p12 = pnand %p583_p11, %p580_p10 }
 0x206   :  { %588 = shalt.err (!%p585_p12)
}
 0x207   :  { %402 = dma.vmem_to_hbm [thread:$0]  %s400_s17, 256, %s873_s5, [#allocation4]  }
 0x208   :  { %591 = dma.done.wait [#allocation4], 256  }
 0x209   :  { %592 = vsyncadd [#allocation4], 4294967040 }
 0x20a   :  { %406 = vsyncpa [#allocation4], 1 }
 0x20b   :  { %407 = vsyncpa [#allocation5], 1 }

</bundles_post_ra>
